<compile_context>
chip_gen: v7x
topology: tpu7x:2x2x1
jax: 0.10.0
libtpu: 0.0.40
codegen_flags: <defaults>
</compile_context>

<pallas_src>
import jax
import jax.numpy as jnp
from jax.experimental import pallas as pl
from jax.experimental.pallas import tpu as pltpu


def _round_up(x: int, m: int) -> int:
    return ((x + m - 1) // m) * m


def critic_kernel(x_ref, w1_ref, b1_ref, w2_ref, b2_ref, w3_ref, b3_ref,
                  out_ref):
    # fc1: bf16 operands, f32 accumulation on the MXU; bias+ReLU in f32 (VPU)
    h = jnp.dot(x_ref[...], w1_ref[...], preferred_element_type=jnp.float32)
    h = jnp.maximum(h + b1_ref[...], 0.0)
    # fc2
    h = jnp.dot(h.astype(jnp.bfloat16), w2_ref[...],
                preferred_element_type=jnp.float32)
    h = jnp.maximum(h + b2_ref[...], 0.0)
    # fc3 (out_features == 1): VPU multiply + lane reduce instead of an
    # N=1 matmul that would waste a full MXU pass.
    q = jnp.sum(h * w3_ref[...], axis=-1, keepdims=True) + b3_ref[...]
    out_ref[...] = q


def critic_forward(state, action, params, *, block_batch=512):
    """state: (B, state_dim), action: (B, action_dim) -> (B, 1) float32."""
    w1, b1, w2, b2, w3_row, b3 = params
    batch = state.shape[0]
    in1, hidden = w1.shape

    # Fuse torch.cat into the wrapper; cast matmul operands to bf16.
    x = jnp.concatenate([state, action], axis=1).astype(jnp.bfloat16)

    # Batch tile: multiple of 8 sublanes, capped by block_batch (sized well
    # under the 32 MiB default scoped VMEM on v7x even with double-buffering).
    tm = min(block_batch, _round_up(batch, 8))
    bp = _round_up(batch, tm)
    if bp != batch:
        x = jnp.pad(x, ((0, bp - batch), (0, 0)))
    grid = (bp // tm,)

    w1b = w1.astype(jnp.bfloat16)
    w2b = w2.astype(jnp.bfloat16)

    flops = 2 * bp * (in1 * hidden + hidden * hidden + hidden)
    bytes_accessed = (x.size * 2 + w1b.size * 2 + w2b.size * 2
                      + (b1.size + b2.size + w3_row.size + b3.size) * 4
                      + bp * 4)

    tiled = lambda i: (i, 0)      # batch-tiled operands
    resident = lambda i: (0, 0)   # weights/biases: same block every step

    out = pl.pallas_call(
        critic_kernel,
        out_shape=jax.ShapeDtypeStruct((bp, 1), jnp.float32),
        grid=grid,
        in_specs=[
            pl.BlockSpec((tm, in1), tiled),        # x tile
            pl.BlockSpec((in1, hidden), resident),  # w1
            pl.BlockSpec((1, hidden), resident),    # b1
            pl.BlockSpec((hidden, hidden), resident),  # w2
            pl.BlockSpec((1, hidden), resident),    # b2
            pl.BlockSpec((1, hidden), resident),    # w3 as a lane row
            pl.BlockSpec((1, 1), resident),         # b3
        ],
        out_specs=pl.BlockSpec((tm, 1), tiled),
        compiler_params=pltpu.CompilerParams(
            dimension_semantics=("parallel",)),
        cost_estimate=pl.CostEstimate(
            flops=flops, transcendentals=0, bytes_accessed=bytes_accessed),
    )(x, w1b, b1, w2b, b2, w3_row, b3)
    # TODO(synk): for store-bound large-batch cases, emit a lane-dense (1, TM)
    # output per tile instead of (TM, 1) to avoid masked partial stores.
    return out[:batch]


def init_params(key, state_dim, action_dim, hidden_dim):
    """Deterministic synthetic init (PyTorch-style uniform fan-in bounds)."""
    ks = jax.random.split(key, 6)
    in1 = state_dim + action_dim
    lim1 = 1.0 / jnp.sqrt(in1)
    lim2 = 1.0 / jnp.sqrt(hidden_dim)
    w1 = jax.random.uniform(ks[0], (in1, hidden_dim), jnp.float32, -lim1, lim1)
    b1 = jax.random.uniform(ks[1], (1, hidden_dim), jnp.float32, -lim1, lim1)
    w2 = jax.random.uniform(ks[2], (hidden_dim, hidden_dim), jnp.float32, -lim2, lim2)
    b2 = jax.random.uniform(ks[3], (1, hidden_dim), jnp.float32, -lim2, lim2)
    w3_row = jax.random.uniform(ks[4], (1, hidden_dim), jnp.float32, -lim2, lim2)
    b3 = jax.random.uniform(ks[5], (1, 1), jnp.float32, -lim2, lim2)
    return (w1, b1, w2, b2, w3_row, b3)


def _reference(state, action, params):
    """Pure-JAX f32 reference matching the PyTorch module."""
    w1, b1, w2, b2, w3_row, b3 = params
    x = jnp.concatenate([state, action], axis=1)
    h = jnp.maximum(x @ w1 + b1, 0.0)
    h = jnp.maximum(h @ w2 + b2, 0.0)
    return h @ w3_row.T + b3


if __name__ == "__main__":
    batch, state_dim, action_dim, hidden_dim = 4, 12, 4, 32

    key = jax.random.PRNGKey(0)
    k_s, k_a, k_p = jax.random.split(key, 3)
    state = jax.random.normal(k_s, (batch, state_dim), jnp.float32)
    action = jax.random.normal(k_a, (batch, action_dim), jnp.float32)
    params = init_params(k_p, state_dim, action_dim, hidden_dim)

    # Small-batch path (single padded tile).
    q = jax.block_until_ready(critic_forward(state, action, params))
    q_ref = _reference(state, action, params)
    assert q.shape == (batch, 1)
    # bf16 matmul operands -> loosened tolerance vs the f32 reference.
    assert jnp.allclose(q, q_ref, atol=2e-2, rtol=2e-2), "mismatch vs reference"

    # Multi-tile path: exercises grid pipelining, padding and resident weights.
    b2_ = 300
    k_s2, k_a2 = jax.random.split(jax.random.PRNGKey(1), 2)
    state2 = jax.random.normal(k_s2, (b2_, state_dim), jnp.float32)
    action2 = jax.random.normal(k_a2, (b2_, action_dim), jnp.float32)
    q2 = jax.block_until_ready(
        critic_forward(state2, action2, params, block_batch=128))
    q2_ref = _reference(state2, action2, params)
    assert q2.shape == (b2_, 1)
    assert jnp.allclose(q2, q2_ref, atol=2e-2, rtol=2e-2), "mismatch vs reference (tiled)"

    print("KERNEL_OK")
</pallas_src>

<mosaic_0001>
module attributes {stable_mosaic.version = 11 : i64} {
  func.func @critic_kernel(%arg0: i32, %arg1: memref<8x16xbf16, #tpu.memory_space<vmem>>, %arg2: memref<16x32xbf16, #tpu.memory_space<vmem>>, %arg3: memref<1x32xf32, #tpu.memory_space<vmem>>, %arg4: memref<32x32xbf16, #tpu.memory_space<vmem>>, %arg5: memref<1x32xf32, #tpu.memory_space<vmem>>, %arg6: memref<1x32xf32, #tpu.memory_space<vmem>>, %arg7: memref<1x1xf32, #tpu.memory_space<vmem>>, %arg8: memref<8x1xf32, #tpu.memory_space<vmem>>) attributes {dimension_semantics = [#tpu.dimension_semantics<parallel>], iteration_bounds = array<i64: 1>, scalar_prefetch = 0 : i64, scratch_operands = 0 : i64, tpu.core_type = #tpu.core_type<tc>, window_params = [{transform_indices = @transform_0, window_bounds = array<i64: 8, 16>}, {pipeline_mode = #tpu.pipeline_mode<synchronous>, transform_indices = @transform_1, window_bounds = array<i64: 16, 32>}, {pipeline_mode = #tpu.pipeline_mode<synchronous>, transform_indices = @transform_2, window_bounds = array<i64: 1, 32>}, {pipeline_mode = #tpu.pipeline_mode<synchronous>, transform_indices = @transform_3, window_bounds = array<i64: 32, 32>}, {pipeline_mode = #tpu.pipeline_mode<synchronous>, transform_indices = @transform_4, window_bounds = array<i64: 1, 32>}, {pipeline_mode = #tpu.pipeline_mode<synchronous>, transform_indices = @transform_5, window_bounds = array<i64: 1, 32>}, {pipeline_mode = #tpu.pipeline_mode<synchronous>, transform_indices = @transform_6, window_bounds = array<i64: 1, 1>}, {transform_indices = @transform_7, window_bounds = array<i64: 8, 1>}]} {
    %c0 = arith.constant 0 : index
    %c0_0 = arith.constant 0 : index
    %0 = vector.load %arg1[%c0, %c0_0] : memref<8x16xbf16, #tpu.memory_space<vmem>>, vector<8x16xbf16>
    %c0_1 = arith.constant 0 : index
    %c0_2 = arith.constant 0 : index
    %1 = vector.load %arg2[%c0_1, %c0_2] : memref<16x32xbf16, #tpu.memory_space<vmem>>, vector<16x32xbf16>
    %cst = arith.constant dense<0.000000e+00> : vector<8x32xf32>
    %2 = tpu.matmul %0, %1, %cst {dimension_numbers = #tpu.dot_dimension_numbers<[1], [0], [0], [1], [0, 0, 1, 1], [], []>} : vector<8x16xbf16>, vector<16x32xbf16>, vector<8x32xf32> -> vector<8x32xf32>
    %c0_3 = arith.constant 0 : index
    %c0_4 = arith.constant 0 : index
    %3 = vector.load %arg3[%c0_3, %c0_4] : memref<1x32xf32, #tpu.memory_space<vmem>>, vector<1x32xf32>
    %4 = vector.broadcast %3 : vector<1x32xf32> to vector<8x32xf32>
    %5 = arith.addf %2, %4 : vector<8x32xf32>
    %cst_5 = arith.constant 0.000000e+00 : f32
    %6 = vector.broadcast %cst_5 : f32 to vector<8x32xf32>
    %7 = arith.maximumf %5, %6 : vector<8x32xf32>
    %8 = arith.truncf %7 : vector<8x32xf32> to vector<8x32xbf16>
    %c0_6 = arith.constant 0 : index
    %c0_7 = arith.constant 0 : index
    %9 = vector.load %arg4[%c0_6, %c0_7] : memref<32x32xbf16, #tpu.memory_space<vmem>>, vector<32x32xbf16>
    %cst_8 = arith.constant dense<0.000000e+00> : vector<8x32xf32>
    %10 = tpu.matmul %8, %9, %cst_8 {dimension_numbers = #tpu.dot_dimension_numbers<[1], [0], [0], [1], [0, 0, 1, 1], [], []>} : vector<8x32xbf16>, vector<32x32xbf16>, vector<8x32xf32> -> vector<8x32xf32>
    %c0_9 = arith.constant 0 : index
    %c0_10 = arith.constant 0 : index
    %11 = vector.load %arg5[%c0_9, %c0_10] : memref<1x32xf32, #tpu.memory_space<vmem>>, vector<1x32xf32>
    %12 = vector.broadcast %11 : vector<1x32xf32> to vector<8x32xf32>
    %13 = arith.addf %10, %12 : vector<8x32xf32>
    %cst_11 = arith.constant 0.000000e+00 : f32
    %14 = vector.broadcast %cst_11 : f32 to vector<8x32xf32>
    %15 = arith.maximumf %13, %14 : vector<8x32xf32>
    %c0_12 = arith.constant 0 : index
    %c0_13 = arith.constant 0 : index
    %16 = vector.load %arg6[%c0_12, %c0_13] : memref<1x32xf32, #tpu.memory_space<vmem>>, vector<1x32xf32>
    %17 = vector.broadcast %16 : vector<1x32xf32> to vector<8x32xf32>
    %18 = arith.mulf %15, %17 : vector<8x32xf32>
    %cst_14 = arith.constant dense<0.000000e+00> : vector<8xf32>
    %19 = vector.multi_reduction <add>, %18, %cst_14 [1] : vector<8x32xf32> to vector<8xf32>
    %20 = vector.shape_cast %19 : vector<8xf32> to vector<8x1xf32>
    %c0_15 = arith.constant 0 : index
    %c0_16 = arith.constant 0 : index
    %21 = vector.load %arg7[%c0_15, %c0_16] : memref<1x1xf32, #tpu.memory_space<vmem>>, vector<1x1xf32>
    %22 = vector.broadcast %21 : vector<1x1xf32> to vector<8x1xf32>
    %23 = arith.addf %20, %22 : vector<8x1xf32>
    %c0_17 = arith.constant 0 : index
    %c0_18 = arith.constant 0 : index
    %24 = vector.load %arg8[%c0_17, %c0_18] : memref<8x1xf32, #tpu.memory_space<vmem>>, vector<8x1xf32>
    tpu.vector_store %arg8[%c0_17, %c0_18], %23 {strides = array<i32>} : memref<8x1xf32, #tpu.memory_space<vmem>>, vector<8x1xf32>,
    return
  }
  func.func @transform_0(%arg0: i32) -> (i32, i32) {
    %c0_i32 = arith.constant 0 : i32
    %c0_i32_0 = arith.constant 0 : i32
    return %arg0, %c0_i32 : i32, i32
  }
  func.func @transform_1(%arg0: i32) -> (i32, i32) {
    %c0_i32 = arith.constant 0 : i32
    %c0_i32_0 = arith.constant 0 : i32
    %c0_i32_1 = arith.constant 0 : i32
    return %c0_i32, %c0_i32_0 : i32, i32
  }
  func.func @transform_2(%arg0: i32) -> (i32, i32) {
    %c0_i32 = arith.constant 0 : i32
    %c0_i32_0 = arith.constant 0 : i32
    %c0_i32_1 = arith.constant 0 : i32
    return %c0_i32, %c0_i32_0 : i32, i32
  }
  func.func @transform_3(%arg0: i32) -> (i32, i32) {
    %c0_i32 = arith.constant 0 : i32
    %c0_i32_0 = arith.constant 0 : i32
    %c0_i32_1 = arith.constant 0 : i32
    return %c0_i32, %c0_i32_0 : i32, i32
  }
  func.func @transform_4(%arg0: i32) -> (i32, i32) {
    %c0_i32 = arith.constant 0 : i32
    %c0_i32_0 = arith.constant 0 : i32
    %c0_i32_1 = arith.constant 0 : i32
    return %c0_i32, %c0_i32_0 : i32, i32
  }
  func.func @transform_5(%arg0: i32) -> (i32, i32) {
    %c0_i32 = arith.constant 0 : i32
    %c0_i32_0 = arith.constant 0 : i32
    %c0_i32_1 = arith.constant 0 : i32
    return %c0_i32, %c0_i32_0 : i32, i32
  }
  func.func @transform_6(%arg0: i32) -> (i32, i32) {
    %c0_i32 = arith.constant 0 : i32
    %c0_i32_0 = arith.constant 0 : i32
    %c0_i32_1 = arith.constant 0 : i32
    return %c0_i32, %c0_i32_0 : i32, i32
  }
  func.func @transform_7(%arg0: i32) -> (i32, i32) {
    %c0_i32 = arith.constant 0 : i32
    %c0_i32_0 = arith.constant 0 : i32
    return %arg0, %c0_i32 : i32, i32
  }
}

</mosaic_0001>

<bundles_post_ra>
// kernel: tpu_custom_call.1
= control target key start
LH: loop header
LB: loop body
LE: loop exit
PB: predicated region body
PF: predicated region fallthrough
CT: control target
= control target key end

     0   :  { %s437_s0 = inlined_call_operand.hbm [shape: bf16[8,16], index: 0, kind: input, shape index: {}]   ;;  %s438_s1 = inlined_call_operand.hbm [shape: bf16[16,32], index: 1, kind: input, shape index: {}]   ;;  %s439_s2 = inlined_call_operand.vmem [shape: f32[1,32], index: 2, kind: input, shape index: {}]   ;;  %s440_s3 = inlined_call_operand.hbm [shape: bf16[32,32], index: 3, kind: input, shape index: {}]   ;;  %s441_s4 = inlined_call_operand.vmem [shape: f32[1,32], index: 4, kind: input, shape index: {}]   ;;  %s442_s5 = inlined_call_operand.vmem [shape: f32[1,32], index: 5, kind: input, shape index: {}]   ;;  %s443_s6 = inlined_call_operand.<no memory space> [shape: f32[1,1], index: 6, kind: input, shape index: {}]   ;;  %s444_s7 = inlined_call_operand.vmem [shape: f32[8,1], index: 7, kind: output, shape index: {}]  }
   0x1   :  { %v12_v0 = vstv %s443_s6 }
   0x2   :  { %13 = vst [vmem:[#allocation2] sm:$0x1] %v12_v0 }
   0x3   :  { %14 = vsyncpa [#allocation4], 0 }
   0x4   :  { %15 = vsyncpa [#allocation6], 0  ;;  %s333_s26 = smov [#allocation5]   ;;  %s263_s30 = scalar_lea.hbm %s438_s1, 128 }
   0x5   :  { %s31_s27 = sshll.u32 %s333_s26, 4  ;;  %p264_p0 = scmp.ne.s32.totalorder %s438_s1, %s263_s30  ;;  %s32_s27 = int_to_ptr.vmem [resolvable:$true] %s31_s27 }
   0x6   :  { %p267_p1 = scmp.lt.u32.totalorder %s263_s30, %s438_s1 }
   0x8   :  { %p269_p2 = pnand %p267_p1, %p264_p0 }
   0xa   :  { %272 = shalt.err (!%p269_p2)
}
   0xb   :  { %s273_s6 = scalar_lea.vmem %s32_s27, 128  ;;  %p278_p4 = scmp.lt.s32.totalorder %s32_s27, %s32_s27 }
   0xc   :  { %p274_p3 = scmp.ne.s32.totalorder %s32_s27, %s273_s6  ;;  %p279_p5 = scmp.lt.s32.totalorder %s273_s6, %s273_s6 }
   0xe   :  { %p280_p6 = por %p279_p5, %p278_p4 }
  0x10   :  { %p281_p7 = pnand %p280_p6, %p274_p3 }
  0x12   :  { %284 = shalt.err (!%p281_p7)
}
  0x13   :  { %s334_s12 = smov 64   ;;  %s335_s13 = smov 4  }
  0x14   :  { %37 = dma.hbm_to_vmem [thread:$0]  %s438_s1, 128, %s32_s27, [#allocation6], %s334_s12, %s334_s12, %s335_s13  }
  0x15   :  { %s336_s16 = smov [#allocation3]   ;;  %s337_s18 = smov [#allocation7]  }
  0x16   :  { %s22_s17 = sshll.u32 %s336_s16, 4  ;;  %s45_s19 = sshll.u32 %s337_s18, 4  ;;  %s23_s17 = int_to_ptr.vmem [resolvable:$true] %s22_s17  ;;  %s46_s19 = int_to_ptr.vmem [resolvable:$true] %s45_s19 }
  0x17   :  { %s285_s22 = scalar_lea.hbm %s437_s0, 64 }
  0x18   :  { %p286_p8 = scmp.ne.s32.totalorder %s437_s0, %s285_s22  ;;  %p289_p9 = scmp.lt.u32.totalorder %s285_s22, %s437_s0 }
  0x1a   :  { %p291_p10 = pnand %p289_p9, %p286_p8 }
  0x1c   :  { %294 = shalt.err (!%p291_p10)
}
  0x1d   :  { %s295_s1 = scalar_lea.vmem %s23_s17, 64  ;;  %p300_p12 = scmp.lt.s32.totalorder %s23_s17, %s23_s17 }
  0x1e   :  { %p296_p11 = scmp.ne.s32.totalorder %s23_s17, %s295_s1  ;;  %p301_p13 = scmp.lt.s32.totalorder %s295_s1, %s295_s1 }
  0x20   :  { %p302_p0 = por %p301_p13, %p300_p12 }
  0x22   :  { %p303_p1 = pnand %p302_p0, %p296_p11 }
  0x24   :  { %306 = shalt.err (!%p303_p1)
}
  0x25   :  { %25 = dma.hbm_to_vmem [thread:$0]  %s437_s0, 64, %s23_s17, [#allocation4]  }
  0x26   :  { %s307_s8 = scalar_lea.hbm %s440_s3, 256 }
  0x27   :  { %p308_p2 = scmp.ne.s32.totalorder %s440_s3, %s307_s8  ;;  %p311_p3 = scmp.lt.u32.totalorder %s307_s8, %s440_s3 }
  0x29   :  { %p313_p4 = pnand %p311_p3, %p308_p2 }
  0x2b   :  { %316 = shalt.err (!%p313_p4)
}
  0x2c   :  { %s317_s14 = scalar_lea.vmem %s46_s19, 256  ;;  %p322_p6 = scmp.lt.s32.totalorder %s46_s19, %s46_s19 }
  0x2d   :  { %p318_p5 = scmp.ne.s32.totalorder %s46_s19, %s317_s14  ;;  %p323_p7 = scmp.lt.s32.totalorder %s317_s14, %s317_s14 }
  0x2f   :  { %p324_p8 = por %p323_p7, %p322_p6 }
  0x31   :  { %p325_p9 = pnand %p324_p8, %p318_p5 }
  0x33   :  { %328 = shalt.err (!%p325_p9)
}
  0x34   :  { %51 = dma.hbm_to_vmem [thread:$0]  %s440_s3, 256, %s46_s19, [#allocation6], %s334_s12, %s334_s12, %s335_s13  }
  0x35   :  { %329 = dma.done.wait [#allocation4], 64  }
  0x36   :  { %330 = vsyncadd [#allocation4], 4294967232 }
  0x37   :  { %331 = dma.done.wait [#allocation6], 384  }
  0x38   :  { %332 = vsyncadd [#allocation6], 4294966912  ;;  %v338_v1 = vmov 0.0   ;;  %vm339_vm0 = vmmov 0   ;;  %v260_v2 = vld [vmem:[#allocation5] sm:$0xff]   ;;  %vm84_vm1 = vcmask 130048  }
  0x39   :  { %239 = vmatprep.subr.bf16.mxu0 %v338_v1  ;;  %241 = vmatprep.mubr.msk.bf16.mxu0 %vm339_vm0, %v338_v1  ;;  %v68_v3 = vld [vmem:[#allocation3] sm:$0xf]  ;;  %v261_v4 = vld [vmem:[#allocation7] sm:$0xff]   ;;  %v262_v5 = vld [vmem:[#allocation7 + $0x8] sm:$0xff]   ;;  %vm153_vm2 = vcmask 261120   ;;  %vm217_vm3 = vcmask 7168  }
  0x3a   :  { %245 = vmatprep.subr.bf16.mxu1 %v338_v1  ;;  %249 = vmatprep.mubr.msk.bf16.mxu1 %vm339_vm0, %v338_v1  ;;  %v225_v6 = vld [vmem:[%s439_s2] ss:$0 sm:$0xff] }
  0x3b   :  { %240 = vmatpush3.bf16.msra.mxu0 %v260_v2  ;;  %246 = vmatpush3.bf16.msra.mxu1 %v261_v4  ;;  %v228_v14 = vld [vmem:[%s441_s4] ss:$0 sm:$0xff] }
  0x3c   :  { %247 = vmatprep.subr.bf16.mxu1 %v338_v1  ;;  %v232_v19 = vld [vmem:[%s442_s5] ss:$0 sm:$0xff] }
  0x3d   :  { %v233_v24 = vld [vmem:[#allocation2] ss:$0 sm:$0xff] }
  0x3e   :  { %242 = vmatmul.mubr.msk.bf16.vlgmr.msra.gmra.mrb[0].mxu0 %vm84_vm1, %v68_v3 }
  0x3f   :  { %248 = vmatpush3.bf16.msra.mxu1 %v262_v5 }
 0x111   :  { %v122_v7 = vpop.f32.mrb[0].mxu0 }
 0x112   :  { %v123_v8 = vadd.f32 %v225_v6, %v122_v7  ;;  %v243_v9 = vpop.f32.mrb[1].mxu0 }
 0x113   :  { %v125_v10 = vpop.f32.mrb[2].mxu0 }
 0x114   :  { %v128_v11 = vmax.f32 %v123_v8, 0.0  ;;  %v244_v12 = vpop.f32.mrb[3].mxu0 }
 0x116   :  { %v129_v13 = vpack.c.bf16 %v128_v11, %v128_v11 }
 0x118   :  { %250 = vmatmul.mubr.msk.bf16.vlgmr.msra.gmra.mrb[0].mxu1 %vm153_vm2, %v129_v13 }
 0x1eb   :  { %v191_v15 = vpop.f32.mrb[0].mxu1 }
 0x1ec   :  { %v192_v16 = vadd.f32 %v228_v14, %v191_v15  ;;  %v251_v17 = vpop.f32.mrb[1].mxu1 }
 0x1ed   :  { %v194_v18 = vpop.f32.mrb[2].mxu1 }
 0x1ee   :  { %v197_v20 = vmax.f32 %v192_v16, 0.0  ;;  %v252_v21 = vpop.f32.mrb[3].mxu1 }
 0x1f0   :  { %v205_v22 = vmul.f32 %v232_v19, %v197_v20 }
 0x1f2   :  { %v206_v23 = vsel %vm153_vm2, %v205_v22, 0.0 }
 0x1f3   :  { %207 = vadd.xlane.f32.xlu0 %v206_v23 }
 0x280   :  { %v208_v25 = vpop.xlane.xlu0 %207 }
 0x281   :  { %v216_v26 = vadd.f32 %v233_v24, %v208_v25 }
 0x283   :  { %218 = vst.msk [vmem:[%s444_s7] sm:$0xff] %vm217_vm3, %v216_v26 }
 0x284   :  { %223 = vsyncpa [#allocation4], 1 }
 0x285   :  { %224 = vsyncpa [#allocation6], 1 }

</bundles_post_ra>
